<compile_context>
chip_gen: v7x
topology: tpu7x:2x2x1
jax: 0.10.0
libtpu: 0.0.40
codegen_flags: <defaults>
</compile_context>

<pallas_src>
import functools

import jax
import jax.numpy as jnp
from jax.experimental import pallas as pl
from jax.experimental.pallas import tpu as pltpu

_NEG_SLOPE = 0.01   # nn.LeakyReLU default negative_slope
_IN_EPS = 1e-5      # nn.InstanceNorm2d default eps (affine=False)


def _round_up(v, m):
    return (v + m - 1) // m * m


def _unet_innermost_kernel(p_ref, w1_ref, b1_ref, w2_ref, b2_ref,
                           wt_ref, bt_ref, mask_ref, selr_ref, selb_ref,
                           out_ref, *, W2, S2, Cp):
    """One grid step == one PAIR of batch samples packed into 2*S lanes.

    Activations are (Cp, 2*S): channels on sublanes, the two samples' flattened
    pooled spatial extents side by side on lanes.  3x3 taps = XLU lane
    rotations + one precomputed mask multiply; each conv and the transpose-conv
    are a single MXU matmul; InstanceNorm stats use a segmented selector matmul.
    """
    p = p_ref[0]                                            # (Cp, 2S)

    # 3x3 tap lane shifts over the packed lane axis.  Lanes where a roll pulls
    # data across the sample boundary (or wraps around the 2S extent) are
    # exactly the zero-padded border taps, which mask_ref zeroes -- valid for
    # 3x3 taps since |shift| <= W2 + 1.
    shifts = []
    for ky in range(3):
        for kx in range(3):
            shifts.append((-((ky - 1) * W2 + (kx - 1))) % S2)

    half_a = selb_ref[0:1, :]                               # (1, 2S) 1.0 on sample A lanes
    half_b = selb_ref[1:2, :]                               # (1, 2S) 1.0 on sample B lanes

    def conv3x3_in_lrelu(act, w_ref, b_ref):
        # im2col: 9 rolled copies (each (Cp, 2S), 8-sublane aligned) stacked into
        # (9*Cp, 2S), then one fused multiply by the border/sample mask.
        pieces = [pltpu.roll(act, s, 1) if s else act for s in shifts]
        patches = jnp.concatenate(pieces, axis=0) * mask_ref[...]       # (9*Cp, 2S)
        # Single MXU pass: (Cp, 9*Cp) @ (9*Cp, 2S) -> (Cp, 2S)
        y = jnp.dot(w_ref[...], patches,
                    preferred_element_type=jnp.float32) + b_ref[...]
        # InstanceNorm2d (affine=False, biased variance), per packed sample:
        # one selector matmul gives E[y] and E[y^2] for both lane halves.
        yy = jnp.concatenate([y, y * y], axis=0)                         # (2Cp, 2S)
        stats = jnp.dot(yy, selr_ref[...],
                        preferred_element_type=jnp.float32)              # (2Cp, 2)
        ey, ey2 = stats[:Cp], stats[Cp:]                                 # (Cp, 2) each
        rstd = jax.lax.rsqrt(ey2 - ey * ey + _IN_EPS)                    # EUP
        # Broadcast per-half mean / rstd back onto the lanes (outer products).
        mean_b = ey[:, 0:1] * half_a + ey[:, 1:2] * half_b               # (Cp, 2S)
        rstd_b = rstd[:, 0:1] * half_a + rstd[:, 1:2] * half_b           # (Cp, 2S)
        y = (y - mean_b) * rstd_b
        return jnp.maximum(y, _NEG_SLOPE * y)                            # LeakyReLU

    h = conv3x3_in_lrelu(p, w1_ref, b1_ref)                  # (Cp, 2S)
    h = conv3x3_in_lrelu(h, w2_ref, b2_ref)                  # (Cp, 2S)

    # ConvTranspose2d(Cout, Cin, k=2, s=2): non-overlapping, so one matmul emits
    # all 4 taps; rows = (tap, out_channel), lanes stay the packed pooled spatial.
    out_ref[0] = jnp.dot(wt_ref[...], h,
                         preferred_element_type=jnp.float32) + bt_ref[...]


@jax.jit
def unet_innermost_block(x, w1, b1, w2, b2, wt, bt):
    """x: (N, Cin, H, W) float32 NCHW like PyTorch. Returns (N, 2*Cin, H, W)."""
    N, Cin, H, W = x.shape
    Cout = w1.shape[0]
    assert H % 2 == 0 and W % 2 == 0, "innermost block needs even H, W"
    H2, W2 = H // 2, W // 2
    S = H2 * W2
    S2 = 2 * S
    x = x.astype(jnp.float32)

    # --- pad batch to even so two samples pack into the lane axis per step ---
    Np = _round_up(N, 2)
    xp = x if Np == N else jnp.concatenate(
        [x, jnp.zeros((Np - N, Cin, H, W), jnp.float32)], axis=0)
    G = Np // 2

    # --- glue: MaxPool2d(2,2) + flatten + pack sample pairs into lanes ---
    p = jnp.max(xp.reshape(Np, Cin, H2, 2, W2, 2), axis=(3, 5)).reshape(Np, Cin, S)
    p = p.reshape(G, 2, Cin, S).transpose(0, 2, 1, 3).reshape(G, Cin, S2)

    # --- channel padding to an 8-aligned block shared by both convs ---
    Cp = _round_up(max(Cin, Cout), 8)

    def pad_axis(a, axis, size):
        pad = [(0, 0)] * a.ndim
        pad[axis] = (0, size - a.shape[axis])
        return jnp.pad(a, pad)

    p = pad_axis(p, 1, Cp)                                   # (G, Cp, 2S)

    f32 = jnp.float32
    # Conv2d (O, I, 3, 3) -> (Cp, 9*Cp), column index (ky*3+kx)*Cp + i (zero-padded)
    w1_m = pad_axis(pad_axis(jnp.transpose(w1, (0, 2, 3, 1)).astype(f32), 3, Cp),
                    0, Cp).reshape(Cp, 9 * Cp)
    w2_m = pad_axis(pad_axis(jnp.transpose(w2, (0, 2, 3, 1)).astype(f32), 3, Cp),
                    0, Cp).reshape(Cp, 9 * Cp)
    b1_m = pad_axis(b1.astype(f32), 0, Cp).reshape(Cp, 1)
    b2_m = pad_axis(b2.astype(f32), 0, Cp).reshape(Cp, 1)
    # ConvTranspose2d (I, O, 2, 2) -> (4*Cin, Cp), row index (ky*2+kx)*Cin + c
    wt_m = pad_axis(jnp.transpose(wt, (2, 3, 1, 0)).astype(f32),
                    3, Cp).reshape(4 * Cin, Cp)
    bt_m = jnp.tile(bt.astype(f32).reshape(1, Cin), (4, 1)).reshape(4 * Cin, 1)

    # --- precomputed border/sample mask for the im2col slab (grid-invariant) ---
    lane = jnp.arange(S2) % S
    row, col = lane // W2, lane % W2
    tap_masks = []
    for ky in range(3):
        for kx in range(3):
            dy, dx = ky - 1, kx - 1
            tap_masks.append((row + dy >= 0) & (row + dy < H2) &
                             (col + dx >= 0) & (col + dx < W2))
    mask = jnp.repeat(jnp.stack(tap_masks, 0).astype(f32)[:, None, :],
                      Cp, axis=1).reshape(9 * Cp, S2)

    # --- segmented-InstanceNorm selectors: reduce (scaled 1/S) and broadcast ---
    half = jnp.arange(S2) < S
    selr = jnp.stack([half, ~half], axis=1).astype(f32) / float(S)   # (2S, 2)
    selb = jnp.stack([half, ~half], axis=0).astype(f32)              # (2, 2S)

    kernel = functools.partial(_unet_innermost_kernel, W2=W2, S2=S2, Cp=Cp)

    def full(shape):
        return pl.BlockSpec(shape, lambda g: (0,) * len(shape))

    out_taps = pl.pallas_call(
        kernel,
        grid=(G,),
        out_shape=jax.ShapeDtypeStruct((G, 4 * Cin, S2), jnp.float32),
        in_specs=[pl.BlockSpec((1, Cp, S2), lambda g: (g, 0, 0)),
                  full((Cp, 9 * Cp)), full((Cp, 1)),
                  full((Cp, 9 * Cp)), full((Cp, 1)),
                  full((4 * Cin, Cp)), full((4 * Cin, 1)),
                  full((9 * Cp, S2)), full((S2, 2)), full((2, S2))],
        out_specs=pl.BlockSpec((1, 4 * Cin, S2), lambda g: (g, 0, 0)),
        compiler_params=pltpu.CompilerParams(
            dimension_semantics=("parallel",)),   # pair axis -> both v7x TCs when G>1
    )(p, w1_m, b1_m, w2_m, b2_m, wt_m, bt_m, mask, selr, selb)

    # --- glue: interleave the 4 transpose-conv taps + unpack pairs + skip concat ---
    up = out_taps.reshape(G, 2, 2, Cin, 2, H2, W2)           # (g, ky, kx, c, s, i, j)
    up = jnp.transpose(up, (0, 4, 3, 5, 1, 6, 2)).reshape(Np, Cin, H, W)[:N]
    # center_crop(model(x), H, W) is the identity here (upconv restores H, W)
    return jnp.concatenate([x, up], axis=1)                  # (N, 2*Cin, H, W)


def _reference(x, w1, b1, w2, b2, wt, bt):
    """Pure-JAX (XLA) reference mirroring the PyTorch module."""
    p = jax.lax.reduce_window(x, -jnp.inf, jax.lax.max,
                              window_dimensions=(1, 1, 2, 2),
                              window_strides=(1, 1, 2, 2), padding='VALID')

    def contract(h, w, b):
        y = jax.lax.conv_general_dilated(
            h, w, window_strides=(1, 1), padding=((1, 1), (1, 1)),
            dimension_numbers=('NCHW', 'OIHW', 'NCHW'))
        y = y + b[None, :, None, None]
        mean = jnp.mean(y, axis=(2, 3), keepdims=True)
        var = jnp.mean((y - mean) ** 2, axis=(2, 3), keepdims=True)
        y = (y - mean) * jax.lax.rsqrt(var + _IN_EPS)
        return jnp.where(y >= 0, y, _NEG_SLOPE * y)

    h = contract(p, w1, b1)
    h = contract(h, w2, b2)
    # ConvTranspose2d(k=2, s=2) == dilated conv with flipped, IO-swapped kernel
    wt_conv = jnp.flip(jnp.transpose(wt, (1, 0, 2, 3)), axis=(2, 3))
    up = jax.lax.conv_general_dilated(
        h, wt_conv, window_strides=(1, 1), padding=((1, 1), (1, 1)),
        lhs_dilation=(2, 2), dimension_numbers=('NCHW', 'OIHW', 'NCHW'))
    up = up + bt[None, :, None, None]
    return jnp.concatenate([x, up], axis=1)


if __name__ == "__main__":
    key = jax.random.PRNGKey(0)
    N, Cin, H, W = 2, 4, 16, 16
    Cout = 2 * Cin   # innermost block requires out_channels == 2 * in_channels
    ks = jax.random.split(key, 7)
    x = jax.random.normal(ks[0], (N, Cin, H, W), jnp.float32)
    w1 = 0.2 * jax.random.normal(ks[1], (Cout, Cin, 3, 3), jnp.float32)
    b1 = 0.1 * jax.random.normal(ks[2], (Cout,), jnp.float32)
    w2 = 0.2 * jax.random.normal(ks[3], (Cout, Cout, 3, 3), jnp.float32)
    b2 = 0.1 * jax.random.normal(ks[4], (Cout,), jnp.float32)
    wt = 0.2 * jax.random.normal(ks[5], (Cout, Cin, 2, 2), jnp.float32)  # ConvTranspose2d weight (I, O, kh, kw)
    bt = 0.1 * jax.random.normal(ks[6], (Cin,), jnp.float32)

    out = jax.block_until_ready(unet_innermost_block(x, w1, b1, w2, b2, wt, bt))
    ref = jax.block_until_ready(_reference(x, w1, b1, w2, b2, wt, bt))

    assert out.shape == (N, 2 * Cin, H, W), out.shape
    assert jnp.allclose(out, ref, rtol=1e-3, atol=1e-3), \
        float(jnp.max(jnp.abs(out - ref)))
    print("KERNEL_OK")
</pallas_src>

<mosaic_0001>
module attributes {stable_mosaic.version = 11 : i64} {
  func.func @_unet_innermost_kernel(%arg0: i32, %arg1: memref<1x8x128xf32, #tpu.memory_space<vmem>>, %arg2: memref<8x72xf32, #tpu.memory_space<vmem>>, %arg3: memref<8x1xf32, #tpu.memory_space<vmem>>, %arg4: memref<8x72xf32, #tpu.memory_space<vmem>>, %arg5: memref<8x1xf32, #tpu.memory_space<vmem>>, %arg6: memref<16x8xf32, #tpu.memory_space<vmem>>, %arg7: memref<16x1xf32, #tpu.memory_space<vmem>>, %arg8: memref<72x128xf32, #tpu.memory_space<vmem>>, %arg9: memref<128x2xf32, #tpu.memory_space<vmem>>, %arg10: memref<2x128xf32, #tpu.memory_space<vmem>>, %arg11: memref<1x16x128xf32, #tpu.memory_space<vmem>>) attributes {dimension_semantics = [#tpu.dimension_semantics<parallel>], iteration_bounds = array<i64: 1>, scalar_prefetch = 0 : i64, scratch_operands = 0 : i64, tpu.core_type = #tpu.core_type<tc>, window_params = [{transform_indices = @transform_0, window_bounds = array<i64: 1, 8, 128>}, {pipeline_mode = #tpu.pipeline_mode<synchronous>, transform_indices = @transform_1, window_bounds = array<i64: 8, 72>}, {pipeline_mode = #tpu.pipeline_mode<synchronous>, transform_indices = @transform_2, window_bounds = array<i64: 8, 1>}, {pipeline_mode = #tpu.pipeline_mode<synchronous>, transform_indices = @transform_3, window_bounds = array<i64: 8, 72>}, {pipeline_mode = #tpu.pipeline_mode<synchronous>, transform_indices = @transform_4, window_bounds = array<i64: 8, 1>}, {pipeline_mode = #tpu.pipeline_mode<synchronous>, transform_indices = @transform_5, window_bounds = array<i64: 16, 8>}, {pipeline_mode = #tpu.pipeline_mode<synchronous>, transform_indices = @transform_6, window_bounds = array<i64: 16, 1>}, {pipeline_mode = #tpu.pipeline_mode<synchronous>, transform_indices = @transform_7, window_bounds = array<i64: 72, 128>}, {pipeline_mode = #tpu.pipeline_mode<synchronous>, transform_indices = @transform_8, window_bounds = array<i64: 128, 2>}, {pipeline_mode = #tpu.pipeline_mode<synchronous>, transform_indices = @transform_9, window_bounds = array<i64: 2, 128>}, {transform_indices = @transform_10, window_bounds = array<i64: 1, 16, 128>}]} {
    %c0 = arith.constant 0 : index
    %c0_0 = arith.constant 0 : index
    %c0_1 = arith.constant 0 : index
    %0 = vector.load %arg1[%c0, %c0_0, %c0_1] : memref<1x8x128xf32, #tpu.memory_space<vmem>>, vector<1x8x128xf32>
    %1 = vector.shape_cast %0 : vector<1x8x128xf32> to vector<8x128xf32>
    %c0_2 = arith.constant 0 : index
    %c0_3 = arith.constant 0 : index
    %2 = vector.load %arg10[%c0_2, %c0_3] : memref<2x128xf32, #tpu.memory_space<vmem>>, vector<1x128xf32>
    %c1 = arith.constant 1 : index
    %c0_4 = arith.constant 0 : index
    %3 = vector.load %arg10[%c1, %c0_4] : memref<2x128xf32, #tpu.memory_space<vmem>>, vector<1x128xf32>
    %c9_i32 = arith.constant 9 : i32
    %4 = tpu.dynamic_rotate %1 by %c9_i32 dim 1 : vector<8x128xf32>, i32 -> vector<8x128xf32>
    %c8_i32 = arith.constant 8 : i32
    %5 = tpu.dynamic_rotate %1 by %c8_i32 dim 1 : vector<8x128xf32>, i32 -> vector<8x128xf32>
    %c7_i32 = arith.constant 7 : i32
    %6 = tpu.dynamic_rotate %1 by %c7_i32 dim 1 : vector<8x128xf32>, i32 -> vector<8x128xf32>
    %c1_i32 = arith.constant 1 : i32
    %7 = tpu.dynamic_rotate %1 by %c1_i32 dim 1 : vector<8x128xf32>, i32 -> vector<8x128xf32>
    %c127_i32 = arith.constant 127 : i32
    %8 = tpu.dynamic_rotate %1 by %c127_i32 dim 1 : vector<8x128xf32>, i32 -> vector<8x128xf32>
    %c121_i32 = arith.constant 121 : i32
    %9 = tpu.dynamic_rotate %1 by %c121_i32 dim 1 : vector<8x128xf32>, i32 -> vector<8x128xf32>
    %c120_i32 = arith.constant 120 : i32
    %10 = tpu.dynamic_rotate %1 by %c120_i32 dim 1 : vector<8x128xf32>, i32 -> vector<8x128xf32>
    %c119_i32 = arith.constant 119 : i32
    %11 = tpu.dynamic_rotate %1 by %c119_i32 dim 1 : vector<8x128xf32>, i32 -> vector<8x128xf32>
    %12 = tpu.concatenate %4, %5, %6, %7, %1, %8, %9, %10, %11 in 0 : vector<8x128xf32>, vector<8x128xf32>, vector<8x128xf32>, vector<8x128xf32>, vector<8x128xf32>, vector<8x128xf32>, vector<8x128xf32>, vector<8x128xf32>, vector<8x128xf32> -> vector<72x128xf32>
    %c0_5 = arith.constant 0 : index
    %c0_6 = arith.constant 0 : index
    %13 = vector.load %arg8[%c0_5, %c0_6] : memref<72x128xf32, #tpu.memory_space<vmem>>, vector<72x128xf32>
    %14 = arith.mulf %12, %13 : vector<72x128xf32>
    %c0_7 = arith.constant 0 : index
    %c0_8 = arith.constant 0 : index
    %15 = vector.load %arg2[%c0_7, %c0_8] : memref<8x72xf32, #tpu.memory_space<vmem>>, vector<8x72xf32>
    %cst = arith.constant dense<0.000000e+00> : vector<8x128xf32>
    %16 = tpu.matmul %15, %14, %cst {dimension_numbers = #tpu.dot_dimension_numbers<[1], [0], [0], [1], [0, 0, 1, 1], [], []>} : vector<8x72xf32>, vector<72x128xf32>, vector<8x128xf32> -> vector<8x128xf32>
    %c0_9 = arith.constant 0 : index
    %c0_10 = arith.constant 0 : index
    %17 = vector.load %arg3[%c0_9, %c0_10] : memref<8x1xf32, #tpu.memory_space<vmem>>, vector<8x1xf32>
    %18 = vector.broadcast %17 : vector<8x1xf32> to vector<8x128xf32>
    %19 = arith.addf %16, %18 : vector<8x128xf32>
    %20 = arith.mulf %19, %19 : vector<8x128xf32>
    %21 = tpu.concatenate %19, %20 in 0 : vector<8x128xf32>, vector<8x128xf32> -> vector<16x128xf32>
    %c0_11 = arith.constant 0 : index
    %c0_12 = arith.constant 0 : index
    %22 = vector.load %arg9[%c0_11, %c0_12] : memref<128x2xf32, #tpu.memory_space<vmem>>, vector<128x2xf32>
    %cst_13 = arith.constant dense<0.000000e+00> : vector<16x2xf32>
    %23 = tpu.matmul %21, %22, %cst_13 {dimension_numbers = #tpu.dot_dimension_numbers<[1], [0], [0], [1], [0, 0, 1, 1], [], []>} : vector<16x128xf32>, vector<128x2xf32>, vector<16x2xf32> -> vector<16x2xf32>
    %24 = vector.extract_strided_slice %23 {offsets = [0, 0], sizes = [8, 2], strides = [1, 1]} : vector<16x2xf32> to vector<8x2xf32>
    %25 = vector.extract_strided_slice %23 {offsets = [8, 0], sizes = [8, 2], strides = [1, 1]} : vector<16x2xf32> to vector<8x2xf32>
    %26 = arith.mulf %24, %24 : vector<8x2xf32>
    %27 = arith.subf %25, %26 : vector<8x2xf32>
    %cst_14 = arith.constant 9.99999974E-6 : f32
    %28 = vector.broadcast %cst_14 : f32 to vector<8x2xf32>
    %29 = arith.addf %27, %28 : vector<8x2xf32>
    %30 = math.rsqrt %29 : vector<8x2xf32>
    %31 = vector.extract_strided_slice %24 {offsets = [0, 0], sizes = [8, 1], strides = [1, 1]} : vector<8x2xf32> to vector<8x1xf32>
    %32 = vector.broadcast %31 : vector<8x1xf32> to vector<8x128xf32>
    %33 = vector.broadcast %2 : vector<1x128xf32> to vector<8x128xf32>
    %34 = arith.mulf %32, %33 : vector<8x128xf32>
    %35 = vector.extract_strided_slice %24 {offsets = [0, 1], sizes = [8, 1], strides = [1, 1]} : vector<8x2xf32> to vector<8x1xf32>
    %36 = vector.broadcast %35 : vector<8x1xf32> to vector<8x128xf32>
    %37 = vector.broadcast %3 : vector<1x128xf32> to vector<8x128xf32>
    %38 = arith.mulf %36, %37 : vector<8x128xf32>
    %39 = arith.addf %34, %38 : vector<8x128xf32>
    %40 = vector.extract_strided_slice %30 {offsets = [0, 0], sizes = [8, 1], strides = [1, 1]} : vector<8x2xf32> to vector<8x1xf32>
    %41 = vector.broadcast %40 : vector<8x1xf32> to vector<8x128xf32>
    %42 = vector.broadcast %2 : vector<1x128xf32> to vector<8x128xf32>
    %43 = arith.mulf %41, %42 : vector<8x128xf32>
    %44 = vector.extract_strided_slice %30 {offsets = [0, 1], sizes = [8, 1], strides = [1, 1]} : vector<8x2xf32> to vector<8x1xf32>
    %45 = vector.broadcast %44 : vector<8x1xf32> to vector<8x128xf32>
    %46 = vector.broadcast %3 : vector<1x128xf32> to vector<8x128xf32>
    %47 = arith.mulf %45, %46 : vector<8x128xf32>
    %48 = arith.addf %43, %47 : vector<8x128xf32>
    %49 = arith.subf %19, %39 : vector<8x128xf32>
    %50 = arith.mulf %49, %48 : vector<8x128xf32>
    %cst_15 = arith.constant 0.00999999977 : f32
    %51 = vector.broadcast %cst_15 : f32 to vector<8x128xf32>
    %52 = arith.mulf %51, %50 : vector<8x128xf32>
    %53 = arith.maximumf %50, %52 : vector<8x128xf32>
    %c9_i32_16 = arith.constant 9 : i32
    %54 = tpu.dynamic_rotate %53 by %c9_i32_16 dim 1 : vector<8x128xf32>, i32 -> vector<8x128xf32>
    %c8_i32_17 = arith.constant 8 : i32
    %55 = tpu.dynamic_rotate %53 by %c8_i32_17 dim 1 : vector<8x128xf32>, i32 -> vector<8x128xf32>
    %c7_i32_18 = arith.constant 7 : i32
    %56 = tpu.dynamic_rotate %53 by %c7_i32_18 dim 1 : vector<8x128xf32>, i32 -> vector<8x128xf32>
    %c1_i32_19 = arith.constant 1 : i32
    %57 = tpu.dynamic_rotate %53 by %c1_i32_19 dim 1 : vector<8x128xf32>, i32 -> vector<8x128xf32>
    %c127_i32_20 = arith.constant 127 : i32
    %58 = tpu.dynamic_rotate %53 by %c127_i32_20 dim 1 : vector<8x128xf32>, i32 -> vector<8x128xf32>
    %c121_i32_21 = arith.constant 121 : i32
    %59 = tpu.dynamic_rotate %53 by %c121_i32_21 dim 1 : vector<8x128xf32>, i32 -> vector<8x128xf32>
    %c120_i32_22 = arith.constant 120 : i32
    %60 = tpu.dynamic_rotate %53 by %c120_i32_22 dim 1 : vector<8x128xf32>, i32 -> vector<8x128xf32>
    %c119_i32_23 = arith.constant 119 : i32
    %61 = tpu.dynamic_rotate %53 by %c119_i32_23 dim 1 : vector<8x128xf32>, i32 -> vector<8x128xf32>
    %62 = tpu.concatenate %54, %55, %56, %57, %53, %58, %59, %60, %61 in 0 : vector<8x128xf32>, vector<8x128xf32>, vector<8x128xf32>, vector<8x128xf32>, vector<8x128xf32>, vector<8x128xf32>, vector<8x128xf32>, vector<8x128xf32>, vector<8x128xf32> -> vector<72x128xf32>
    %c0_24 = arith.constant 0 : index
    %c0_25 = arith.constant 0 : index
    %63 = vector.load %arg8[%c0_24, %c0_25] : memref<72x128xf32, #tpu.memory_space<vmem>>, vector<72x128xf32>
    %64 = arith.mulf %62, %63 : vector<72x128xf32>
    %c0_26 = arith.constant 0 : index
    %c0_27 = arith.constant 0 : index
    %65 = vector.load %arg4[%c0_26, %c0_27] : memref<8x72xf32, #tpu.memory_space<vmem>>, vector<8x72xf32>
    %cst_28 = arith.constant dense<0.000000e+00> : vector<8x128xf32>
    %66 = tpu.matmul %65, %64, %cst_28 {dimension_numbers = #tpu.dot_dimension_numbers<[1], [0], [0], [1], [0, 0, 1, 1], [], []>} : vector<8x72xf32>, vector<72x128xf32>, vector<8x128xf32> -> vector<8x128xf32>
    %c0_29 = arith.constant 0 : index
    %c0_30 = arith.constant 0 : index
    %67 = vector.load %arg5[%c0_29, %c0_30] : memref<8x1xf32, #tpu.memory_space<vmem>>, vector<8x1xf32>
    %68 = vector.broadcast %67 : vector<8x1xf32> to vector<8x128xf32>
    %69 = arith.addf %66, %68 : vector<8x128xf32>
    %70 = arith.mulf %69, %69 : vector<8x128xf32>
    %71 = tpu.concatenate %69, %70 in 0 : vector<8x128xf32>, vector<8x128xf32> -> vector<16x128xf32>
    %c0_31 = arith.constant 0 : index
    %c0_32 = arith.constant 0 : index
    %72 = vector.load %arg9[%c0_31, %c0_32] : memref<128x2xf32, #tpu.memory_space<vmem>>, vector<128x2xf32>
    %cst_33 = arith.constant dense<0.000000e+00> : vector<16x2xf32>
    %73 = tpu.matmul %71, %72, %cst_33 {dimension_numbers = #tpu.dot_dimension_numbers<[1], [0], [0], [1], [0, 0, 1, 1], [], []>} : vector<16x128xf32>, vector<128x2xf32>, vector<16x2xf32> -> vector<16x2xf32>
    %74 = vector.extract_strided_slice %73 {offsets = [0, 0], sizes = [8, 2], strides = [1, 1]} : vector<16x2xf32> to vector<8x2xf32>
    %75 = vector.extract_strided_slice %73 {offsets = [8, 0], sizes = [8, 2], strides = [1, 1]} : vector<16x2xf32> to vector<8x2xf32>
    %76 = arith.mulf %74, %74 : vector<8x2xf32>
    %77 = arith.subf %75, %76 : vector<8x2xf32>
    %cst_34 = arith.constant 9.99999974E-6 : f32
    %78 = vector.broadcast %cst_34 : f32 to vector<8x2xf32>
    %79 = arith.addf %77, %78 : vector<8x2xf32>
    %80 = math.rsqrt %79 : vector<8x2xf32>
    %81 = vector.extract_strided_slice %74 {offsets = [0, 0], sizes = [8, 1], strides = [1, 1]} : vector<8x2xf32> to vector<8x1xf32>
    %82 = vector.broadcast %81 : vector<8x1xf32> to vector<8x128xf32>
    %83 = vector.broadcast %2 : vector<1x128xf32> to vector<8x128xf32>
    %84 = arith.mulf %82, %83 : vector<8x128xf32>
    %85 = vector.extract_strided_slice %74 {offsets = [0, 1], sizes = [8, 1], strides = [1, 1]} : vector<8x2xf32> to vector<8x1xf32>
    %86 = vector.broadcast %85 : vector<8x1xf32> to vector<8x128xf32>
    %87 = vector.broadcast %3 : vector<1x128xf32> to vector<8x128xf32>
    %88 = arith.mulf %86, %87 : vector<8x128xf32>
    %89 = arith.addf %84, %88 : vector<8x128xf32>
    %90 = vector.extract_strided_slice %80 {offsets = [0, 0], sizes = [8, 1], strides = [1, 1]} : vector<8x2xf32> to vector<8x1xf32>
    %91 = vector.broadcast %90 : vector<8x1xf32> to vector<8x128xf32>
    %92 = vector.broadcast %2 : vector<1x128xf32> to vector<8x128xf32>
    %93 = arith.mulf %91, %92 : vector<8x128xf32>
    %94 = vector.extract_strided_slice %80 {offsets = [0, 1], sizes = [8, 1], strides = [1, 1]} : vector<8x2xf32> to vector<8x1xf32>
    %95 = vector.broadcast %94 : vector<8x1xf32> to vector<8x128xf32>
    %96 = vector.broadcast %3 : vector<1x128xf32> to vector<8x128xf32>
    %97 = arith.mulf %95, %96 : vector<8x128xf32>
    %98 = arith.addf %93, %97 : vector<8x128xf32>
    %99 = arith.subf %69, %89 : vector<8x128xf32>
    %100 = arith.mulf %99, %98 : vector<8x128xf32>
    %cst_35 = arith.constant 0.00999999977 : f32
    %101 = vector.broadcast %cst_35 : f32 to vector<8x128xf32>
    %102 = arith.mulf %101, %100 : vector<8x128xf32>
    %103 = arith.maximumf %100, %102 : vector<8x128xf32>
    %c0_36 = arith.constant 0 : index
    %c0_37 = arith.constant 0 : index
    %104 = vector.load %arg6[%c0_36, %c0_37] : memref<16x8xf32, #tpu.memory_space<vmem>>, vector<16x8xf32>
    %cst_38 = arith.constant dense<0.000000e+00> : vector<16x128xf32>
    %105 = tpu.matmul %104, %103, %cst_38 {dimension_numbers = #tpu.dot_dimension_numbers<[1], [0], [0], [1], [0, 0, 1, 1], [], []>} : vector<16x8xf32>, vector<8x128xf32>, vector<16x128xf32> -> vector<16x128xf32>
    %c0_39 = arith.constant 0 : index
    %c0_40 = arith.constant 0 : index
    %106 = vector.load %arg7[%c0_39, %c0_40] : memref<16x1xf32, #tpu.memory_space<vmem>>, vector<16x1xf32>
    %107 = vector.broadcast %106 : vector<16x1xf32> to vector<16x128xf32>
    %108 = arith.addf %105, %107 : vector<16x128xf32>
    %c0_41 = arith.constant 0 : index
    %c0_42 = arith.constant 0 : index
    %c0_43 = arith.constant 0 : index
    %109 = vector.load %arg11[%c0_41, %c0_42, %c0_43] : memref<1x16x128xf32, #tpu.memory_space<vmem>>, vector<1x16x128xf32>
    %110 = vector.shape_cast %109 : vector<1x16x128xf32> to vector<16x128xf32>
    %111 = vector.shape_cast %108 : vector<16x128xf32> to vector<1x16x128xf32>
    tpu.vector_store %arg11[%c0_41, %c0_42, %c0_43], %111 {strides = array<i32>} : memref<1x16x128xf32, #tpu.memory_space<vmem>>, vector<1x16x128xf32>,
    return
  }
  func.func @transform_0(%arg0: i32) -> (i32, i32, i32) {
    %c0_i32 = arith.constant 0 : i32
    %c0_i32_0 = arith.constant 0 : i32
    %c0_i32_1 = arith.constant 0 : i32
    return %arg0, %c0_i32, %c0_i32_0 : i32, i32, i32
  }
  func.func @transform_1(%arg0: i32) -> (i32, i32) {
    %c0_i32 = arith.constant 0 : i32
    %c0_i32_0 = arith.constant 0 : i32
    %c0_i32_1 = arith.constant 0 : i32
    return %c0_i32, %c0_i32_0 : i32, i32
  }
  func.func @transform_2(%arg0: i32) -> (i32, i32) {
    %c0_i32 = arith.constant 0 : i32
    %c0_i32_0 = arith.constant 0 : i32
    %c0_i32_1 = arith.constant 0 : i32
    return %c0_i32, %c0_i32_0 : i32, i32
  }
  func.func @transform_3(%arg0: i32) -> (i32, i32) {
    %c0_i32 = arith.constant 0 : i32
    %c0_i32_0 = arith.constant 0 : i32
    %c0_i32_1 = arith.constant 0 : i32
    return %c0_i32, %c0_i32_0 : i32, i32
  }
  func.func @transform_4(%arg0: i32) -> (i32, i32) {
    %c0_i32 = arith.constant 0 : i32
    %c0_i32_0 = arith.constant 0 : i32
    %c0_i32_1 = arith.constant 0 : i32
    return %c0_i32, %c0_i32_0 : i32, i32
  }
  func.func @transform_5(%arg0: i32) -> (i32, i32) {
    %c0_i32 = arith.constant 0 : i32
    %c0_i32_0 = arith.constant 0 : i32
    %c0_i32_1 = arith.constant 0 : i32
    return %c0_i32, %c0_i32_0 : i32, i32
  }
  func.func @transform_6(%arg0: i32) -> (i32, i32) {
    %c0_i32 = arith.constant 0 : i32
    %c0_i32_0 = arith.constant 0 : i32
    %c0_i32_1 = arith.constant 0 : i32
    return %c0_i32, %c0_i32_0 : i32, i32
  }
  func.func @transform_7(%arg0: i32) -> (i32, i32) {
    %c0_i32 = arith.constant 0 : i32
    %c0_i32_0 = arith.constant 0 : i32
    %c0_i32_1 = arith.constant 0 : i32
    return %c0_i32, %c0_i32_0 : i32, i32
  }
  func.func @transform_8(%arg0: i32) -> (i32, i32) {
    %c0_i32 = arith.constant 0 : i32
    %c0_i32_0 = arith.constant 0 : i32
    %c0_i32_1 = arith.constant 0 : i32
    return %c0_i32, %c0_i32_0 : i32, i32
  }
  func.func @transform_9(%arg0: i32) -> (i32, i32) {
    %c0_i32 = arith.constant 0 : i32
    %c0_i32_0 = arith.constant 0 : i32
    %c0_i32_1 = arith.constant 0 : i32
    return %c0_i32, %c0_i32_0 : i32, i32
  }
  func.func @transform_10(%arg0: i32) -> (i32, i32, i32) {
    %c0_i32 = arith.constant 0 : i32
    %c0_i32_0 = arith.constant 0 : i32
    %c0_i32_1 = arith.constant 0 : i32
    return %arg0, %c0_i32, %c0_i32_0 : i32, i32, i32
  }
}

</mosaic_0001>

<bundles_post_ra>
// kernel: tile.6
= control target key start
LH: loop header
LB: loop body
LE: loop exit
PB: predicated region body
PF: predicated region fallthrough
CT: control target
= control target key end

     0   :  { %s22_s0 = inlined_call_operand.vmem [shape: f32[4], index: 0, kind: input, shape index: {}]   ;;  %s23_s1 = inlined_call_operand.vmem [shape: f32[4,1,1,4], index: 1, kind: output, shape index: {}]  }
   0x1   :  { %v4_v0 = vld [vmem:[%s22_s0] ss:$0 sm:$0xff] }
   0x2   :  { %5 = vst [vmem:[%s23_s1] sm:$0xf] %v4_v0 }

// kernel: tile.0
= control target key start
LH: loop header
LB: loop body
LE: loop exit
PB: predicated region body
PF: predicated region fallthrough
CT: control target
= control target key end

     0   :  { %s34_s8 = smov 125   ;;  %vm7_vm0 = vcmask 7168   ;;  %s35_s11 = smov 126   ;;  %s61_s0 = inlined_call_operand.vmem [shape: f32[4,1,1,4], index: 0, kind: input, shape index: {}]   ;;  %s62_s1 = inlined_call_operand.vmem [shape: f32[16,1], index: 1, kind: output, shape index: {}]  }
   0x1   :  { %v4_v0 = vld [vmem:[%s61_s0] sm:$0xf]  ;;  %s33_s0 = smov 127  }
   0x2   :  { %5 = vst [vmem:[#allocation0] sm:$0xf] %v4_v0 }
   0x9   :  { %v9_v1 = vld [vmem:[#allocation0] sm:$0xf]  }
   0xa   :  { %v21_v2 = vld [vmem:[#allocation0] sm:$0xf]   ;;  %10 = vrot.lane.b32.xlu0 %v9_v1, %s33_s0 }
   0xb   :  { %22 = vrot.lane.b32.xlu1 %v21_v2, %s34_s8  ;;  %v6_v3 = vld [vmem:[#allocation0] sm:$0xf]  }
   0xc   :  { %v15_v4 = vld [vmem:[#allocation0] sm:$0xf]   ;;  %8 = vst.msk [vmem:[%s62_s1] ss:$4 sm:$0xf] %vm7_vm0, %v6_v3  }
   0xe   :  { %16 = vrot.lane.b32.xlu0 %v15_v4, %s35_s11 }
  0x7c   :  { %v11_v5 = vpop.permute.xlu0 %10  }
  0x7d   :  { %v23_v6 = vpop.permute.xlu1 %22   ;;  %27 = vst.msk [vmem:[%s62_s1 + $0x1] ss:$4 sm:$0xf] %vm7_vm0, %v11_v5  }
  0x7e   :  { %29 = vst.msk [vmem:[%s62_s1 + $0x3] ss:$4 sm:$0xf] %vm7_vm0, %v23_v6  }
  0x80   :  { %v17_v7 = vpop.permute.xlu0 %16  }
  0x81   :  { %28 = vst.msk [vmem:[%s62_s1 + $0x2] ss:$4 sm:$0xf] %vm7_vm0, %v17_v7  }

// kernel: unet_innermost_block.1
= control target key start
LH: loop header
LB: loop body
LE: loop exit
PB: predicated region body
PF: predicated region fallthrough
CT: control target
= control target key end

     0   :  { %v895_v1 = vmov 0.0|0.0   ;;  %s896_s15 = smov 7   ;;  %s897_s16 = smov 9   ;;  %vm902_vm0 = vmmov 0   ;;  %v903_v2 = vmov 0.0   ;;  %v906_v3 = vmov 0   ;;  %s1220_s0 = inlined_call_operand.vmem [shape: f32[1,8,128], index: 0, kind: input, shape index: {}]   ;;  %s1221_s2 = inlined_call_operand.vmem [shape: f32[8,1], index: 2, kind: input, shape index: {}]   ;;  %s1222_s8 = inlined_call_operand.vmem [shape: f32[128,2], index: 8, kind: input, shape index: {}]   ;;  %s1223_s7 = inlined_call_operand.vmem [shape: f32[72,128], index: 7, kind: input, shape index: {}]   ;;  %s1224_s1 = inlined_call_operand.vmem [shape: f32[8,72], index: 1, kind: input, shape index: {}]   ;;  %s1225_s9 = inlined_call_operand.vmem [shape: f32[2,128], index: 9, kind: input, shape index: {}]   ;;  %s1226_s4 = inlined_call_operand.vmem [shape: f32[8,1], index: 4, kind: input, shape index: {}]   ;;  %s1227_s3 = inlined_call_operand.vmem [shape: f32[8,72], index: 3, kind: input, shape index: {}]   ;;  %s1228_s5 = inlined_call_operand.vmem [shape: f32[16,8], index: 5, kind: input, shape index: {}]   ;;  %s1229_s6 = inlined_call_operand.vmem [shape: f32[16,1], index: 6, kind: input, shape index: {}]   ;;  %s1230_s10 = inlined_call_operand.vmem [shape: f32[1,16,128], index: 10, kind: output, shape index: {}]  }
   0x1   :  { %v966_v0 = vld [vmem:[%s1220_s0] sm:$0xff]  ;;  %782 = vmatprep.subr.bf16.mxu0 %v895_v1  ;;  %s898_s17 = smov 1   ;;  %s899_s18 = smov 8   ;;  %683 = vmatprep.mubr.msk.f32.mxu0 %vm902_vm0, %v903_v2  ;;  %v155_v6 = vld [vmem:[%s1222_s8 + $0x8] sm:$0xff]  ;;  %v156_v8 = vld [vmem:[%s1222_s8 + $0x10] sm:$0xff]  ;;  %vm79_vm1 = vcmask 588800  }
   0x2   :  { %42 = vrot.lane.b32.xlu1 %v966_v0, %s896_s15  ;;  %38 = vrot.lane.b32.xlu0 %v966_v0, %s897_s16  ;;  %s900_s0 = smov 127   ;;  %s901_s19 = smov 121   ;;  %v73_v4 = vld [vmem:[%s1221_s2] sm:$0xff]  ;;  %v157_v9 = vld [vmem:[%s1222_s8 + $0x18] sm:$0xff]  ;;  %vm512_vm2 = vcmask 64512  }
   0x3   :  { %s904_s20 = smov 120   ;;  %s905_s21 = smov 119   ;;  %883 = vset.pattern.permute.xlu0 %v906_v3  ;;  %v154_v5 = vld [vmem:[%s1222_s8] sm:$0xff]  ;;  %884 = vset.pattern.permute.xlu1 %v906_v3  ;;  %v1006_v10 = vpack.c.bf16 %v157_v9, %v156_v8  ;;  %v159_v12 = vld [vmem:[%s1222_s8 + $0x28] sm:$0xff]  ;;  %v160_v14 = vld [vmem:[%s1222_s8 + $0x30] sm:$0xff]  ;;  %v907_v9 = vmov 1  }
   0x4   :  { %v998_v7 = vpack.c.bf16 %v155_v6, %v154_v5  ;;  %v158_v11 = vld [vmem:[%s1222_s8 + $0x20] sm:$0xff]  ;;  %v161_v15 = vld [vmem:[%s1222_s8 + $0x38] sm:$0xff]  ;;  %v163_v18 = vld [vmem:[%s1222_s8 + $0x48] sm:$0xff] }
   0x5   :  { %v1017_v13 = vpack.c.bf16 %v159_v12, %v158_v11  ;;  %v1027_v16 = vpack.c.bf16 %v161_v15, %v160_v14  ;;  %v162_v17 = vld [vmem:[%s1222_s8 + $0x40] sm:$0xff]  ;;  %v164_v20 = vld [vmem:[%s1222_s8 + $0x50] sm:$0xff]  ;;  %v165_v21 = vld [vmem:[%s1222_s8 + $0x58] sm:$0xff] }
   0x6   :  { %44 = vrot.lane.b32.xlu1 %v966_v0, %s898_s17  ;;  %40 = vrot.lane.b32.xlu0 %v966_v0, %s899_s18  ;;  %v1037_v19 = vpack.c.bf16 %v163_v18, %v162_v17  ;;  %v1047_v22 = vpack.c.bf16 %v165_v21, %v164_v20  ;;  %v166_v23 = vld [vmem:[%s1222_s8 + $0x60] sm:$0xff]  ;;  %v167_v24 = vld [vmem:[%s1222_s8 + $0x68] sm:$0xff] }
   0x7   :  { %795 = vmatprep.subr.bf16.mxu1 %v998_v7  ;;  %v1057_v25 = vpack.c.bf16 %v167_v24, %v166_v23  ;;  %v1065_v28 = vld [vmem:[%s1223_s7] sm:$0xff]  ;;  %v1070_v29 = vld [vmem:[%s1223_s7 + $0x8] sm:$0xff]  ;;  %v1075_v30 = vld [vmem:[%s1223_s7 + $0x10] sm:$0xff] }
   0x8   :  { %797 = vmatpush3.bf16.msra.mxu1 %v998_v7  ;;  %v1080_v31 = vld [vmem:[%s1223_s7 + $0x18] sm:$0xff]  ;;  %v1087_v36 = vld [vmem:[%s1223_s7 + $0x20] sm:$0xff]  ;;  %v1092_v37 = vld [vmem:[%s1223_s7 + $0x28] sm:$0xff] }
   0x9   :  { %799 = vmatprep.subr.bf16.mxu1 %v1006_v10  ;;  %v67_v42 = vmul.f32 %v1087_v36, %v966_v0  ;;  %v1103_v44 = vld [vmem:[%s1223_s7 + $0x30] sm:$0xff]  ;;  %v1108_v46 = vld [vmem:[%s1223_s7 + $0x38] sm:$0xff]  ;;  %v1117_v53 = vld [vmem:[%s1223_s7 + $0x40] sm:$0xff] }
   0xa   :  { %46 = vrot.lane.b32.xlu0 %v966_v0, %s900_s0  ;;  %48 = vrot.lane.b32.xlu1 %v966_v0, %s901_s19  ;;  %v72_v56 = vld [vmem:[%s1224_s1] sm:$0xff]  ;;  %v168_v57 = vld [vmem:[%s1222_s8 + $0x70] sm:$0xff] }
   0xb   :  { %v169_v58 = vld [vmem:[%s1222_s8 + $0x78] sm:$0xff]  ;;  %v1153_v12 = vld [vmem:[%s1225_s9 + $0x1] ss:$0 sm:$0xff]  ;;  %v1158_v14 = vld [vmem:[%s1225_s9] ss:$0 sm:$0xff] }
   0xc   :  { %801 = vmatpush3.bf16.msra.mxu1 %v1006_v10  ;;  %v822_v59 = vpack.c.bf16 %v169_v58, %v168_v57 }
   0xd   :  { %803 = vmatprep.subr.bf16.mxu1 %v1017_v13 }
   0xe   :  { %50 = vrot.lane.b32.xlu0 %v966_v0, %s904_s20  ;;  %52 = vrot.lane.b32.xlu1 %v966_v0, %s905_s21 }
  0x10   :  { %805 = vmatpush3.bf16.msra.mxu1 %v1017_v13 }
  0x11   :  { %807 = vmatprep.subr.bf16.mxu1 %v1027_v16 }
  0x12   :  { %76 = vperm.xlu0 %883, %v73_v4  }
  0x14   :  { %809 = vmatpush3.bf16.msra.mxu1 %v1027_v16 }
  0x15   :  { %811 = vmatprep.subr.bf16.mxu1 %v1037_v19 }
  0x18   :  { %813 = vmatpush3.bf16.msra.mxu1 %v1037_v19 }
  0x19   :  { %815 = vmatprep.subr.bf16.mxu1 %v1047_v22 }
  0x1c   :  { %817 = vmatpush3.bf16.msra.mxu1 %v1047_v22 }
  0x1d   :  { %819 = vmatprep.subr.bf16.mxu1 %v1057_v25 }
  0x20   :  { %821 = vmatpush3.bf16.msra.mxu1 %v1057_v25 }
  0x21   :  { %823 = vmatprep.subr.bf16.mxu1 %v822_v59 }
  0x24   :  { %825 = vmatpush3.bf16.msra.mxu1 %v822_v59 }
  0x25   :  { %839 = vmatprep.subr.bf16.mxu1 %v998_v7 }
  0x74   :  { %v43_v26 = vpop.permute.xlu1 %42  ;;  %v39_v27 = vpop.permute.xlu0 %38 }
  0x75   :  { %v63_v34 = vmul.f32 %v1065_v28, %v39_v27  ;;  %v65_v38 = vmul.f32 %v1075_v30, %v43_v26  ;;  %v311_v27 = vld [vmem:[%s1226_s4] sm:$0xff] }
  0x78   :  { %v45_v32 = vpop.permute.xlu1 %44  ;;  %v41_v33 = vpop.permute.xlu0 %40 }
  0x79   :  { %v64_v35 = vmul.f32 %v1070_v29, %v41_v33  ;;  %v66_v39 = vmul.f32 %v1080_v31, %v45_v32 }
  0x7b   :  { %v783_v40 = vpack.c.bf16 %v64_v35, %v63_v34  ;;  %v786_v47 = vpack.c.bf16 %v66_v39, %v65_v38 }
  0x7c   :  { %v47_v41 = vpop.permute.xlu0 %46  ;;  %v49_v45 = vpop.permute.xlu1 %48 }
  0x7d   :  { %784 = vmatpush3.bf16.msra.mxu0 %v783_v40  ;;  %v68_v43 = vmul.f32 %v1092_v37, %v47_v41  ;;  %v69_v50 = vmul.f32 %v1103_v44, %v49_v45 }
  0x7e   :  { %785 = vmatprep.subr.bf16.mxu0 %v895_v1 }
  0x7f   :  { %v789_v49 = vpack.c.bf16 %v68_v43, %v67_v42 }
  0x80   :  { %v51_v48 = vpop.permute.xlu0 %50  ;;  %v53_v54 = vpop.permute.xlu1 %52 }
  0x81   :  { %787 = vmatpush3.bf16.msra.mxu0 %v786_v47  ;;  %v70_v51 = vmul.f32 %v1108_v46, %v51_v48  ;;  %v71_v55 = vmul.f32 %v1117_v53, %v53_v54 }
  0x82   :  { %788 = vmatprep.subr.bf16.mxu0 %v895_v1 }
  0x83   :  { %v792_v52 = vpack.c.bf16 %v70_v51, %v69_v50 }
  0x85   :  { %790 = vmatpush3.bf16.msra.mxu0 %v789_v49 }
  0x86   :  { %791 = vmatprep.subr.bf16.mxu0 %v895_v1 }
  0x89   :  { %793 = vmatpush3.bf16.msra.mxu0 %v792_v52 }
  0x8a   :  { %681 = vmatprep.subr.mxu0 %v903_v2 }
  0x8d   :  { %682 = vmatpush3.msra.mxu0 %v71_v55 }
  0x8e   :  { %684 = vmatmul.mubr.msk.f32.vlgmr.msra.gmra.mrb[0].mxu0 %vm79_vm1, %v72_v56  ;;  %826 = vmatprep.subr.bf16.mxu0 %v895_v1 }
  0x8f   :  { %739 = vmatprep.mubr.msk.f32.mxu0 %vm902_vm0, %v903_v2 }
  0x91   :  { %v77_v60 = vpop.permute.xlu0 %76 }
 0x161   :  { %v149_v61 = vpop.f32.mrb[0].mxu0 }
 0x162   :  { %v150_v62 = vadd.f32 %v149_v61, %v77_v60  ;;  %v685_v63 = vpop.f32.mrb[1].mxu0  ;;  %v500_v60 = vld [vmem:[%s1229_s6] sm:$0xff]  ;;  %v501_v61 = vld [vmem:[%s1229_s6 + $0x8] sm:$0xff] }
 0x164   :  { %718 = vmatprep.mubr.f32.mxu1 %v150_v62  ;;  %v153_v0 = vmul.f32 %v150_v62, %v150_v62 }
 0x166   :  { %719 = vmatmul.mubr.f32.vlgmr.msra.gmra.mrb[0].mxu1 %v153_v0 }
 0x167   :  { %841 = vmatpush3.bf16.msra.mxu1 %v998_v7 }
 0x168   :  { %843 = vmatprep.subr.bf16.mxu1 %v1006_v10 }
 0x16b   :  { %845 = vmatpush3.bf16.msra.mxu1 %v1006_v10 }
 0x16c   :  { %847 = vmatprep.subr.bf16.mxu1 %v1017_v13 }
 0x16f   :  { %849 = vmatpush3.bf16.msra.mxu1 %v1017_v13 }
 0x170   :  { %851 = vmatprep.subr.bf16.mxu1 %v1027_v16 }
 0x173   :  { %853 = vmatpush3.bf16.msra.mxu1 %v1027_v16 }
 0x174   :  { %855 = vmatprep.subr.bf16.mxu1 %v1037_v19 }
 0x177   :  { %857 = vmatpush3.bf16.msra.mxu1 %v1037_v19 }
 0x178   :  { %859 = vmatprep.subr.bf16.mxu1 %v1047_v22 }
 0x17b   :  { %861 = vmatpush3.bf16.msra.mxu1 %v1047_v22 }
 0x17c   :  { %863 = vmatprep.subr.bf16.mxu1 %v1057_v25 }
 0x17f   :  { %865 = vmatpush3.bf16.msra.mxu1 %v1057_v25 }
 0x180   :  { %867 = vmatprep.subr.bf16.mxu1 %v822_v59 }
 0x183   :  { %869 = vmatpush3.bf16.msra.mxu1 %v822_v59  ;;  %v498_v59 = vld [vmem:[%s1228_s5] sm:$0xff] }
 0x239   :  { %v720_v4 = vpop.f32.mrb[0].mxu1 }
 0x23a   :  { %v236_v5 = vpop.f32.mrb[1].mxu1 }
 0x23b   :  { %v245_v6 = vmul.f32 %v236_v5, %v236_v5  ;;  %251 = vperm.xlu1 %884, %v236_v5  }
 0x23d   :  { %v246_v7 = vsub.f32 %v720_v4, %v245_v6 }
 0x23f   :  { %v247_v8 = vadd.f32 1e-05, %v246_v7  ;;  %885 = vset.pattern.permute.xlu1 %v907_v9 }
 0x240   :  { %260 = vperm.xlu1 %885, %v236_v5  }
 0x241   :  { %891 = vrsqrt.f32 %v247_v8 }
 0x24b   :  { %v892_v10 = vpop.eup %891 }
 0x24c   :  { %276 = vperm.xlu1 %885, %v892_v10   ;;  %271 = vperm.xlu0 %883, %v892_v10  }
 0x250   :  { %886 = vset.pattern.permute.xlu1 %v906_v3 }
 0x2ba   :  { %v252_v11 = vpop.permute.xlu1 %251 }
 0x2bb   :  { %v258_v16 = vmul.f32 %v1158_v14, %v252_v11 }
 0x2bf   :  { %v261_v13 = vpop.permute.xlu1 %260 }
 0x2c0   :  { %v267_v15 = vmul.f32 %v1153_v12, %v261_v13 }
 0x2c2   :  { %v268_v17 = vadd.f32 %v267_v15, %v258_v16  ;;  %v499_v16 = vld [vmem:[%s1228_s5 + $0x8] sm:$0xff] }
 0x2c4   :  { %v281_v22 = vsub.f32 %v150_v62, %v268_v17 }
 0x2cb   :  { %v277_v18 = vpop.permute.xlu1 %276  ;;  %v272_v19 = vpop.permute.xlu0 %271 }
 0x2cc   :  { %v279_v20 = vmul.f32 %v1153_v12, %v277_v18  ;;  %v274_v21 = vmul.f32 %v1158_v14, %v272_v19 }
 0x2ce   :  { %v280_v23 = vadd.f32 %v279_v20, %v274_v21 }
 0x2d0   :  { %v282_v24 = vmul.f32 %v281_v22, %v280_v23 }
 0x2d2   :  { %v283_v25 = vmul.f32 0.01, %v282_v24 }
 0x2d4   :  { %v284_v26 = vmax.f32 %v282_v24, %v283_v25 }
 0x2d6   :  { %287 = vrot.lane.b32.xlu1 %v284_v26, %s899_s18  ;;  %285 = vrot.lane.b32.xlu0 %v284_v26, %s897_s16  ;;  %v305_v47 = vmul.f32 %v284_v26, %v1087_v36 }
 0x2da   :  { %291 = vrot.lane.b32.xlu1 %v284_v26, %s898_s17  ;;  %289 = vrot.lane.b32.xlu0 %v284_v26, %s896_s15 }
 0x2de   :  { %295 = vrot.lane.b32.xlu1 %v284_v26, %s901_s19  ;;  %293 = vrot.lane.b32.xlu0 %v284_v26, %s900_s0 }
 0x2e2   :  { %299 = vrot.lane.b32.xlu1 %v284_v26, %s905_s21  ;;  %297 = vrot.lane.b32.xlu0 %v284_v26, %s904_s20 }
 0x2e6   :  { %314 = vperm.xlu0 %883, %v311_v27  }
 0x2ea   :  { %887 = vset.pattern.permute.xlu0 %v907_v9 }
 0x348   :  { %v288_v32 = vpop.permute.xlu1 %287  ;;  %v286_v33 = vpop.permute.xlu0 %285 }
 0x349   :  { %v302_v34 = vmul.f32 %v288_v32, %v1070_v29  ;;  %v301_v35 = vmul.f32 %v286_v33, %v1065_v28 }
 0x34b   :  { %v827_v38 = vpack.c.bf16 %v302_v34, %v301_v35 }
 0x34c   :  { %v292_v39 = vpop.permute.xlu1 %291  ;;  %v290_v40 = vpop.permute.xlu0 %289 }
 0x34d   :  { %v304_v41 = vmul.f32 %v292_v39, %v1080_v31  ;;  %v303_v42 = vmul.f32 %v290_v40, %v1075_v30  ;;  %828 = vmatpush3.bf16.msra.mxu0 %v827_v38 }
 0x34e   :  { %829 = vmatprep.subr.bf16.mxu0 %v895_v1 }
 0x34f   :  { %v830_v43 = vpack.c.bf16 %v304_v41, %v303_v42 }
 0x350   :  { %v294_v45 = vpop.permute.xlu0 %293  ;;  %v296_v29 = vpop.permute.xlu1 %295 }
 0x351   :  { %v306_v48 = vmul.f32 %v294_v45, %v1092_v37  ;;  %831 = vmatpush3.bf16.msra.mxu0 %v830_v43  ;;  %v307_v50 = vmul.f32 %v296_v29, %v1103_v44  ;;  %v310_v37 = vld [vmem:[%s1227_s3] sm:$0xff] }
 0x352   :  { %832 = vmatprep.subr.bf16.mxu0 %v895_v1 }
 0x353   :  { %v833_v28 = vpack.c.bf16 %v306_v48, %v305_v47 }
 0x354   :  { %v298_v49 = vpop.permute.xlu0 %297  ;;  %v300_v51 = vpop.permute.xlu1 %299 }
 0x355   :  { %v308_v31 = vmul.f32 %v298_v49, %v1108_v46  ;;  %834 = vmatpush3.bf16.msra.mxu0 %v833_v28  ;;  %v309_v36 = vmul.f32 %v300_v51, %v1117_v53 }
 0x356   :  { %835 = vmatprep.subr.bf16.mxu0 %v895_v1 }
 0x357   :  { %v836_v30 = vpack.c.bf16 %v308_v31, %v307_v50 }
 0x359   :  { %837 = vmatpush3.bf16.msra.mxu0 %v836_v30 }
 0x35a   :  { %737 = vmatprep.subr.mxu0 %v903_v2 }
 0x35d   :  { %738 = vmatpush3.msra.mxu0 %v309_v36 }
 0x35e   :  { %740 = vmatmul.mubr.msk.f32.vlgmr.msra.gmra.mrb[2].mxu0 %vm79_vm1, %v310_v37 }
 0x35f   :  { %779 = vmatprep.mubr.msk.f32.mxu0 %vm512_vm2, %v498_v59 }
 0x365   :  { %v315_v44 = vpop.permute.xlu0 %314 }
 0x431   :  { %v386_v52 = vpop.f32.mrb[2].mxu0 }
 0x432   :  { %v387_v46 = vadd.f32 %v386_v52, %v315_v44  ;;  %v741_v54 = vpop.f32.mrb[3].mxu0 }
 0x434   :  { %v390_v55 = vmul.f32 %v387_v46, %v387_v46  ;;  %774 = vmatprep.mubr.f32.mxu1 %v387_v46 }
 0x436   :  { %775 = vmatmul.mubr.f32.vlgmr.msra.gmra.mrb[2].mxu1 %v390_v55 }
 0x509   :  { %v776_v1 = vpop.f32.mrb[2].mxu1 }
 0x50a   :  { %v457_v56 = vpop.f32.mrb[3].mxu1 }
 0x50b   :  { %v466_v57 = vmul.f32 %v457_v56, %v457_v56  ;;  %477 = vperm.xlu0 %887, %v457_v56   ;;  %472 = vperm.xlu1 %886, %v457_v56  }
 0x50d   :  { %v467_v2 = vsub.f32 %v776_v1, %v466_v57 }
 0x50f   :  { %v468_v53 = vadd.f32 1e-05, %v467_v2  ;;  %889 = vset.pattern.permute.xlu0 %v906_v3 }
 0x510   :  { %504 = vperm.xlu0 %889, %v500_v60  }
 0x511   :  { %893 = vrsqrt.f32 %v468_v53 }
 0x51b   :  { %v894_v58 = vpop.eup %893 }
 0x51c   :  { %484 = vperm.xlu1 %886, %v894_v58  }
 0x520   :  { %888 = vset.pattern.permute.xlu1 %v907_v9 }
 0x521   :  { %489 = vperm.xlu1 %888, %v894_v58  }
 0x525   :  { %890 = vset.pattern.permute.xlu1 %v906_v3 }
 0x526   :  { %509 = vperm.xlu1 %890, %v501_v61  }
 0x58a   :  { %v473_v62 = vpop.permute.xlu1 %472  ;;  %v478_v63 = vpop.permute.xlu0 %477 }
 0x58b   :  { %v480_v3 = vmul.f32 %v1153_v12, %v478_v63  ;;  %v475_v0 = vmul.f32 %v1158_v14, %v473_v62 }
 0x58d   :  { %v481_v5 = vadd.f32 %v480_v3, %v475_v0 }
 0x58f   :  { %v494_v9 = vsub.f32 %v387_v46, %v481_v5  ;;  %v505_v18 = vpop.permute.xlu0 %504 }
 0x59b   :  { %v485_v4 = vpop.permute.xlu1 %484 }
 0x59c   :  { %v487_v7 = vmul.f32 %v1158_v14, %v485_v4 }
 0x5a0   :  { %v490_v6 = vpop.permute.xlu1 %489 }
 0x5a1   :  { %v492_v8 = vmul.f32 %v1153_v12, %v490_v6 }
 0x5a3   :  { %v493_v10 = vadd.f32 %v492_v8, %v487_v7 }
 0x5a5   :  { %v495_v11 = vmul.f32 %v494_v9, %v493_v10  ;;  %v510_v17 = vpop.permute.xlu1 %509 }
 0x5a7   :  { %v496_v13 = vmul.f32 0.01, %v495_v11 }
 0x5a9   :  { %v497_v15 = vmax.f32 %v495_v11, %v496_v13 }
 0x5ab   :  { %777 = vmatprep.subr.mxu0 %v497_v15 }
 0x5ac   :  { %778 = vmatpush3.msra.mxu0 %v497_v15 }
 0x5ad   :  { %780 = vmatmul.mubr.msk.f32.vlgmr.msra.gmra.mrb[4].mxu0 %vm512_vm2, %v499_v16 }
 0x680   :  { %v781_v19 = vpop.f32.mrb[4].mxu0 }
 0x681   :  { %v591_v20 = vadd.f32 %v781_v19, %v510_v17  ;;  %v585_v14 = vpop.f32.mrb[5].mxu0 }
 0x682   :  { %v586_v21 = vadd.f32 %v585_v14, %v505_v18 }
 0x683   :  { %595 = vst [vmem:[%s1230_s10 + $0x8] sm:$0xff] %v591_v20 }
 0x684   :  { %594 = vst [vmem:[%s1230_s10] sm:$0xff] %v586_v21 }

</bundles_post_ra>
